<compile_context>
chip_gen: v6e
topology: v6e:2x2x1
jax: 0.10.0
libtpu: 0.0.40
codegen_flags: <defaults>
</compile_context>

<pallas_src>
import jax
import jax.numpy as jnp
from jax import lax
from jax.experimental import pallas as pl
from jax.experimental.pallas import tpu as pltpu

LANE = 128
BLOCK_BYTES_TARGET = 2 * 1024 * 1024   # ~2 MiB per input per pipeline buffer


def _cores_per_chip():
    # 1 TensorCore on v5e/v6e, 2 on v7x. Fall back to 1 if detection fails.
    try:
        kind = jax.devices()[0].device_kind.lower()
    except Exception:
        return 1
    return 2 if "v7" in kind else 1


def _make_kernel(tm, rows, inner_tiles, emit_mask):
    groups = tm // 8  # tm is always a multiple of 8

    def kernel(x_ref, y_ref, out_ref, acc_ref):
        c = pl.program_id(0)          # core-split axis ("parallel")
        i = pl.program_id(1)          # row-tile reduction axis ("arbitrary")

        @pl.when(i == 0)
        def _():
            acc_ref[...] = jnp.zeros_like(acc_ref)

        x = x_ref[...].astype(jnp.float32)
        y = y_ref[...].astype(jnp.float32)

        def accumulate(d):
            # x^2 + x*y + y^2 via (x+y)^2 - x*y  (one fewer VALU op)
            s = x + y
            q = s * s - x * y
            d3 = d * q                          # x^3 - y^3
            # Per-lane partial sums: reduce only across the leading vreg axis
            # (pure VPU adds); accumulator stays (8, 128)-resident per term.
            acc_ref[0] += jnp.sum((d * d).reshape(groups, 8, LANE), axis=0)
            acc_ref[1] += jnp.sum(jnp.abs(d).reshape(groups, 8, LANE), axis=0)
            acc_ref[2] += jnp.sum((d3 * d3).reshape(groups, 8, LANE), axis=0)

        if emit_mask:
            tile_idx = c * inner_tiles + i
            needs_mask = (tile_idx + 1) * tm > rows   # partial or duplicate tile

            @pl.when(needs_mask)
            def _():
                row_ids = lax.broadcasted_iota(jnp.int32, (tm, LANE), 0)
                valid = (tile_idx * tm + row_ids) < rows
                # Masking d alone zeroes all three accumulated terms; the
                # clamped duplicate tiles hold real finite data -> no NaN risk.
                accumulate(jnp.where(valid, x - y, 0.0))

            @pl.when(jnp.logical_not(needs_mask))
            def _():
                accumulate(x - y)
        else:
            # Statically known that every tile is full and unique.
            accumulate(x - y)

        # Final cross-lane reduction + scalar SMEM write, last step only.
        @pl.when(i == pl.num_programs(1) - 1)
        def _():
            out_ref[0, 0] = jnp.sum(acc_ref[0])
            out_ref[0, 1] = jnp.sum(acc_ref[1])
            out_ref[0, 2] = jnp.sum(acc_ref[2])

    return kernel


def _partial_sums_pallas(x2d, y2d, rows, n_split):
    """Returns [sum((x-y)^2), sum(|x-y|), sum((x^3-y^3)^2)] over x2d/y2d."""
    itemsize = jnp.dtype(x2d.dtype).itemsize
    # ~2 MiB of input per block (TM=4096 for f32, 8192 for 16-bit dtypes).
    tm_max = max(8, (BLOCK_BYTES_TARGET // (LANE * itemsize)) // 8 * 8)
    tm = rows if rows <= tm_max else tm_max
    num_tiles = (rows + tm - 1) // tm
    inner_tiles = (num_tiles + n_split - 1) // n_split
    # Mask code is emitted only if some tile can be partial or duplicated.
    emit_mask = (rows % tm != 0) or (n_split * inner_tiles != num_tiles)

    def in_map(c, i):
        # Clamp so duplicated tiles never index past the array; those tiles
        # are fully masked to zero inside the kernel.
        return (jnp.minimum(c * inner_tiles + i, num_tiles - 1), 0)

    # TODO(synk): on v7x, verify in the trace that the leading "parallel" axis
    # shards across the 2 TensorCores; if not, switch it to pltpu.CORE_PARALLEL.
    partials = pl.pallas_call(
        _make_kernel(tm, rows, inner_tiles, emit_mask),
        out_shape=jax.ShapeDtypeStruct((n_split, 3), jnp.float32),
        grid_spec=pltpu.PrefetchScalarGridSpec(
            num_scalar_prefetch=0,
            grid=(n_split, inner_tiles),
            in_specs=[
                pl.BlockSpec((tm, LANE), in_map),
                pl.BlockSpec((tm, LANE), in_map),
            ],
            out_specs=pl.BlockSpec((1, 3), lambda c, i: (c, 0),
                                   memory_space=pltpu.SMEM),
            scratch_shapes=[pltpu.VMEM((3, 8, LANE), jnp.float32)],
        ),
        compiler_params=pltpu.CompilerParams(
            dimension_semantics=("parallel", "arbitrary"),
            vmem_limit_bytes=32 * 1024 * 1024),
    )(x2d, y2d)
    return jnp.sum(partials, axis=0)   # combine per-core partial sums


def scaled_error_d(x, y):
    """JAX/Pallas equivalent of the PyTorch scaled_error_d.forward."""
    assert x.shape == y.shape
    n = x.size

    xf = jnp.ravel(x)
    yf = jnp.ravel(y)

    align = 8 * LANE
    n_aligned = (n // align) * align
    n_split = _cores_per_chip()

    sums = jnp.zeros((3,), jnp.float32)

    if n_aligned > 0:
        rows = n_aligned // LANE               # multiple of 8
        if n_aligned == n:
            x2d = xf.reshape(rows, LANE)
            y2d = yf.reshape(rows, LANE)
        else:
            # Static prefix slice instead of padding the whole input
            # (avoids a full extra HBM read+write pass per tensor).
            x2d = lax.slice(xf, (0,), (n_aligned,)).reshape(rows, LANE)
            y2d = lax.slice(yf, (0,), (n_aligned,)).reshape(rows, LANE)
        sums = sums + _partial_sums_pallas(x2d, y2d, rows, n_split)

    if n_aligned < n:
        # <1024-element tail reduced with plain jnp.
        xt = xf[n_aligned:].astype(jnp.float32)
        yt = yf[n_aligned:].astype(jnp.float32)
        dt = xt - yt
        d3t = dt * (xt * xt + xt * yt + yt * yt)
        sums = sums + jnp.stack([jnp.sum(dt * dt),
                                 jnp.sum(jnp.abs(dt)),
                                 jnp.sum(d3t * d3t)])

    n_f = jnp.float32(n)
    mse = sums[0] / n_f
    l1 = sums[1] / n_f
    mse_cube = sums[2] / n_f

    meloss = mse + l1
    totloss = mse_cube ** 0.25
    return (meloss ** 3) * totloss


def _reference(x, y):
    x = x.astype(jnp.float32)
    y = y.astype(jnp.float32)
    mse = jnp.mean((x - y) ** 2)
    l1 = jnp.mean(jnp.abs(x - y))
    meloss = mse + l1
    totloss = jnp.mean((x ** 3 - y ** 3) ** 2) ** 0.25
    return (meloss ** 3) * totloss


if __name__ == "__main__":
    key = jax.random.PRNGKey(0)
    kx, ky = jax.random.split(key)
    shape = (2, 4, 16, 16)  # NCHW, small synthetic shapes
    x = jax.random.normal(kx, shape, dtype=jnp.float32)
    y = jax.random.normal(ky, shape, dtype=jnp.float32)

    out = scaled_error_d(x, y)
    out = jax.block_until_ready(out)

    ref = _reference(x, y)
    assert jnp.allclose(out, ref, rtol=1e-4, atol=1e-5), (out, ref)
    print("KERNEL_OK")
</pallas_src>

<mosaic_0001>
module attributes {stable_mosaic.version = 11 : i64} {
  func.func @kernel(%arg0: i32, %arg1: i32, %arg2: memref<16x128xf32, #tpu.memory_space<vmem>>, %arg3: memref<16x128xf32, #tpu.memory_space<vmem>>, %arg4: memref<1x3xf32, #tpu.memory_space<smem>>, %arg5: memref<3x8x128xf32, #tpu.memory_space<vmem>>) attributes {dimension_semantics = [#tpu.dimension_semantics<parallel>, #tpu.dimension_semantics<arbitrary>], iteration_bounds = array<i64: 1, 1>, scalar_prefetch = 0 : i64, scratch_operands = 1 : i64, tpu.core_type = #tpu.core_type<tc>, window_params = [{transform_indices = @transform_0, window_bounds = array<i64: 16, 128>}, {transform_indices = @transform_1, window_bounds = array<i64: 16, 128>}, {transform_indices = @transform_2, window_bounds = array<i64: 1, 3>}]} {
    %c0_i32 = arith.constant 0 : i32
    %0 = arith.cmpi eq, %arg1, %c0_i32 : i32
    %1 = arith.extui %0 : i1 to i32
    %c0_i32_0 = arith.constant 0 : i32
    %2 = arith.cmpi ne, %1, %c0_i32_0 : i32
    scf.if %2 {
      %cst_24 = arith.constant 0.000000e+00 : f32
      %41 = vector.broadcast %cst_24 : f32 to vector<3x8x128xf32>
      %c0_25 = arith.constant 0 : index
      %c0_26 = arith.constant 0 : index
      %c0_27 = arith.constant 0 : index
      %42 = vector.load %arg5[%c0_25, %c0_26, %c0_27] : memref<3x8x128xf32, #tpu.memory_space<vmem>>, vector<3x8x128xf32>
      tpu.vector_store %arg5[%c0_25, %c0_26, %c0_27], %41 {strides = array<i32>} : memref<3x8x128xf32, #tpu.memory_space<vmem>>, vector<3x8x128xf32>,
    } else {
    }
    %c0 = arith.constant 0 : index
    %c0_1 = arith.constant 0 : index
    %3 = vector.load %arg2[%c0, %c0_1] : memref<16x128xf32, #tpu.memory_space<vmem>>, vector<16x128xf32>
    %c0_2 = arith.constant 0 : index
    %c0_3 = arith.constant 0 : index
    %4 = vector.load %arg3[%c0_2, %c0_3] : memref<16x128xf32, #tpu.memory_space<vmem>>, vector<16x128xf32>
    %5 = arith.subf %3, %4 : vector<16x128xf32>
    %6 = arith.addf %3, %4 : vector<16x128xf32>
    %7 = arith.mulf %6, %6 : vector<16x128xf32>
    %8 = arith.mulf %3, %4 : vector<16x128xf32>
    %9 = arith.subf %7, %8 : vector<16x128xf32>
    %10 = arith.mulf %5, %9 : vector<16x128xf32>
    %c0_4 = arith.constant 0 : index
    %c0_5 = arith.constant 0 : index
    %c0_6 = arith.constant 0 : index
    %11 = vector.load %arg5[%c0_4, %c0_5, %c0_6] : memref<3x8x128xf32, #tpu.memory_space<vmem>>, vector<1x8x128xf32>
    %12 = vector.shape_cast %11 : vector<1x8x128xf32> to vector<8x128xf32>
    %13 = arith.mulf %5, %5 : vector<16x128xf32>
    %14 = vector.shape_cast %13 : vector<16x128xf32> to vector<2x8x128xf32>
    %cst = arith.constant dense<0.000000e+00> : vector<8x128xf32>
    %15 = vector.multi_reduction <add>, %14, %cst [0] : vector<2x8x128xf32> to vector<8x128xf32>
    %16 = arith.addf %12, %15 : vector<8x128xf32>
    %c0_7 = arith.constant 0 : index
    %c0_8 = arith.constant 0 : index
    %c0_9 = arith.constant 0 : index
    %17 = vector.load %arg5[%c0_7, %c0_8, %c0_9] : memref<3x8x128xf32, #tpu.memory_space<vmem>>, vector<1x8x128xf32>
    %18 = vector.shape_cast %17 : vector<1x8x128xf32> to vector<8x128xf32>
    %19 = vector.shape_cast %16 : vector<8x128xf32> to vector<1x8x128xf32>
    tpu.vector_store %arg5[%c0_7, %c0_8, %c0_9], %19 {strides = array<i32>} : memref<3x8x128xf32, #tpu.memory_space<vmem>>, vector<1x8x128xf32>,
    %c1 = arith.constant 1 : index
    %c0_10 = arith.constant 0 : index
    %c0_11 = arith.constant 0 : index
    %20 = vector.load %arg5[%c1, %c0_10, %c0_11] : memref<3x8x128xf32, #tpu.memory_space<vmem>>, vector<1x8x128xf32>
    %21 = vector.shape_cast %20 : vector<1x8x128xf32> to vector<8x128xf32>
    %22 = math.absf %5 : vector<16x128xf32>
    %23 = vector.shape_cast %22 : vector<16x128xf32> to vector<2x8x128xf32>
    %cst_12 = arith.constant dense<0.000000e+00> : vector<8x128xf32>
    %24 = vector.multi_reduction <add>, %23, %cst_12 [0] : vector<2x8x128xf32> to vector<8x128xf32>
    %25 = arith.addf %21, %24 : vector<8x128xf32>
    %c1_13 = arith.constant 1 : index
    %c0_14 = arith.constant 0 : index
    %c0_15 = arith.constant 0 : index
    %26 = vector.load %arg5[%c1_13, %c0_14, %c0_15] : memref<3x8x128xf32, #tpu.memory_space<vmem>>, vector<1x8x128xf32>
    %27 = vector.shape_cast %26 : vector<1x8x128xf32> to vector<8x128xf32>
    %28 = vector.shape_cast %25 : vector<8x128xf32> to vector<1x8x128xf32>
    tpu.vector_store %arg5[%c1_13, %c0_14, %c0_15], %28 {strides = array<i32>} : memref<3x8x128xf32, #tpu.memory_space<vmem>>, vector<1x8x128xf32>,
    %c2 = arith.constant 2 : index
    %c0_16 = arith.constant 0 : index
    %c0_17 = arith.constant 0 : index
    %29 = vector.load %arg5[%c2, %c0_16, %c0_17] : memref<3x8x128xf32, #tpu.memory_space<vmem>>, vector<1x8x128xf32>
    %30 = vector.shape_cast %29 : vector<1x8x128xf32> to vector<8x128xf32>
    %31 = arith.mulf %10, %10 : vector<16x128xf32>
    %32 = vector.shape_cast %31 : vector<16x128xf32> to vector<2x8x128xf32>
    %cst_18 = arith.constant dense<0.000000e+00> : vector<8x128xf32>
    %33 = vector.multi_reduction <add>, %32, %cst_18 [0] : vector<2x8x128xf32> to vector<8x128xf32>
    %34 = arith.addf %30, %33 : vector<8x128xf32>
    %c2_19 = arith.constant 2 : index
    %c0_20 = arith.constant 0 : index
    %c0_21 = arith.constant 0 : index
    %35 = vector.load %arg5[%c2_19, %c0_20, %c0_21] : memref<3x8x128xf32, #tpu.memory_space<vmem>>, vector<1x8x128xf32>
    %36 = vector.shape_cast %35 : vector<1x8x128xf32> to vector<8x128xf32>
    %37 = vector.shape_cast %34 : vector<8x128xf32> to vector<1x8x128xf32>
    tpu.vector_store %arg5[%c2_19, %c0_20, %c0_21], %37 {strides = array<i32>} : memref<3x8x128xf32, #tpu.memory_space<vmem>>, vector<1x8x128xf32>,
    %c0_i32_22 = arith.constant 0 : i32
    %38 = arith.cmpi eq, %arg1, %c0_i32_22 : i32
    %39 = arith.extui %38 : i1 to i32
    %c0_i32_23 = arith.constant 0 : i32
    %40 = arith.cmpi ne, %39, %c0_i32_23 : i32
    scf.if %40 {
      %c0_24 = arith.constant 0 : index
      %c0_25 = arith.constant 0 : index
      %c0_26 = arith.constant 0 : index
      %41 = vector.load %arg5[%c0_24, %c0_25, %c0_26] : memref<3x8x128xf32, #tpu.memory_space<vmem>>, vector<1x8x128xf32>
      %42 = vector.shape_cast %41 : vector<1x8x128xf32> to vector<8x128xf32>
      %43 = vector.shape_cast %42 : vector<8x128xf32> to vector<1x8x128xf32>
      %cst_27 = arith.constant dense<0.000000e+00> : vector<1xf32>
      %44 = vector.multi_reduction <add>, %43, %cst_27 [1, 2] : vector<1x8x128xf32> to vector<1xf32>
      %45 = vector.shape_cast %44 : vector<1xf32> to vector<1x1x1xf32>
      %46 = vector.extract %45[0, 0, 0] : f32 from vector<1x1x1xf32>
      %c0_28 = arith.constant 0 : index
      %c0_29 = arith.constant 0 : index
      %47 = memref.load %arg4[%c0_28, %c0_29] : memref<1x3xf32, #tpu.memory_space<smem>>
      memref.store %46, %arg4[%c0_28, %c0_29] : memref<1x3xf32, #tpu.memory_space<smem>>
      %c1_30 = arith.constant 1 : index
      %c0_31 = arith.constant 0 : index
      %c0_32 = arith.constant 0 : index
      %48 = vector.load %arg5[%c1_30, %c0_31, %c0_32] : memref<3x8x128xf32, #tpu.memory_space<vmem>>, vector<1x8x128xf32>
      %49 = vector.shape_cast %48 : vector<1x8x128xf32> to vector<8x128xf32>
      %50 = vector.shape_cast %49 : vector<8x128xf32> to vector<1x8x128xf32>
      %cst_33 = arith.constant dense<0.000000e+00> : vector<1xf32>
      %51 = vector.multi_reduction <add>, %50, %cst_33 [1, 2] : vector<1x8x128xf32> to vector<1xf32>
      %52 = vector.shape_cast %51 : vector<1xf32> to vector<1x1x1xf32>
      %53 = vector.extract %52[0, 0, 0] : f32 from vector<1x1x1xf32>
      %c0_34 = arith.constant 0 : index
      %c1_35 = arith.constant 1 : index
      %54 = memref.load %arg4[%c0_34, %c1_35] : memref<1x3xf32, #tpu.memory_space<smem>>
      memref.store %53, %arg4[%c0_34, %c1_35] : memref<1x3xf32, #tpu.memory_space<smem>>
      %c2_36 = arith.constant 2 : index
      %c0_37 = arith.constant 0 : index
      %c0_38 = arith.constant 0 : index
      %55 = vector.load %arg5[%c2_36, %c0_37, %c0_38] : memref<3x8x128xf32, #tpu.memory_space<vmem>>, vector<1x8x128xf32>
      %56 = vector.shape_cast %55 : vector<1x8x128xf32> to vector<8x128xf32>
      %57 = vector.shape_cast %56 : vector<8x128xf32> to vector<1x8x128xf32>
      %cst_39 = arith.constant dense<0.000000e+00> : vector<1xf32>
      %58 = vector.multi_reduction <add>, %57, %cst_39 [1, 2] : vector<1x8x128xf32> to vector<1xf32>
      %59 = vector.shape_cast %58 : vector<1xf32> to vector<1x1x1xf32>
      %60 = vector.extract %59[0, 0, 0] : f32 from vector<1x1x1xf32>
      %c0_40 = arith.constant 0 : index
      %c2_41 = arith.constant 2 : index
      %61 = memref.load %arg4[%c0_40, %c2_41] : memref<1x3xf32, #tpu.memory_space<smem>>
      memref.store %60, %arg4[%c0_40, %c2_41] : memref<1x3xf32, #tpu.memory_space<smem>>
    } else {
    }
    return
  }
  func.func @transform_0(%arg0: i32, %arg1: i32) -> (i32, i32) {
    %c1_i32 = arith.constant 1 : i32
    %0 = arith.muli %arg0, %c1_i32 : i32
    %1 = arith.addi %0, %arg1 : i32
    %c0_i32 = arith.constant 0 : i32
    %2 = arith.minsi %1, %c0_i32 : i32
    %c0_i32_0 = arith.constant 0 : i32
    %c0_i32_1 = arith.constant 0 : i32
    return %2, %c0_i32_0 : i32, i32
  }
  func.func @transform_1(%arg0: i32, %arg1: i32) -> (i32, i32) {
    %c1_i32 = arith.constant 1 : i32
    %0 = arith.muli %arg0, %c1_i32 : i32
    %1 = arith.addi %0, %arg1 : i32
    %c0_i32 = arith.constant 0 : i32
    %2 = arith.minsi %1, %c0_i32 : i32
    %c0_i32_0 = arith.constant 0 : i32
    %c0_i32_1 = arith.constant 0 : i32
    return %2, %c0_i32_0 : i32, i32
  }
  func.func @transform_2(%arg0: i32, %arg1: i32) -> (i32, i32) {
    %c0_i32 = arith.constant 0 : i32
    %c0_i32_0 = arith.constant 0 : i32
    return %arg0, %c0_i32 : i32, i32
  }
}

</mosaic_0001>

<bundles_post_ra>
// kernel: tpu_custom_call.1
= control target key start
LH: loop header
LB: loop body
LE: loop exit
PB: predicated region body
PF: predicated region fallthrough
CT: control target
= control target key end

     0   :  { %7 = vsyncpa [#allocation4], 0  ;;  %s255_s0 = inlined_call_operand.hbm [shape: f32[16,128], index: 0, kind: input, shape index: {}]   ;;  %s256_s1 = inlined_call_operand.hbm [shape: f32[16,128], index: 1, kind: input, shape index: {}]   ;;  %s257_s2 = inlined_call_operand.hbm [shape: f32[1,3], index: 2, kind: output, shape index: {}]  }
   0x1   :  { %8 = vsyncpa [#allocation7], 0 }
   0x2   :  { %9 = vsyncpa [#allocation5], 0  ;;  %s226_s9 = smov [#allocation3]  }
   0x3   :  { %s21_s10 = sshll.u32 %s226_s9, 4  ;;  %s22_s10 = int_to_ptr.vmem [resolvable:$true] %s21_s10 }
   0x4   :  { %s180_s11 = scalar_lea.vmem %s22_s10, 256  ;;  %p185_p1 = scmp.lt.s32.totalorder %s22_s10, %s22_s10 }
   0x5   :  { %p181_p0 = scmp.ne.s32.totalorder %s22_s10, %s180_s11  ;;  %p186_p2 = scmp.lt.s32.totalorder %s180_s11, %s180_s11 }
   0x7   :  { %p187_p3 = por %p186_p2, %p185_p1 }
   0x9   :  { %p188_p4 = pnand %p187_p3, %p181_p0 }
   0xb   :  { %191 = shalt.err (!%p188_p4)
}
   0xc   :  { %s227_s12 = smov 128   ;;  %s228_s13 = smov 8  }
   0xd   :  { %27 = dma.hbm_to_vmem [thread:$0]  %s255_s0, 256, %s22_s10, [#allocation4], %s227_s12, %s227_s12, %s228_s13  }
   0xe   :  { %s229_s16 = smov [#allocation6]  }
   0xf   :  { %s39_s17 = sshll.u32 %s229_s16, 4  ;;  %s40_s17 = int_to_ptr.vmem [resolvable:$true] %s39_s17 }
  0x10   :  { %s200_s18 = scalar_lea.vmem %s40_s17, 256  ;;  %p205_p6 = scmp.lt.s32.totalorder %s40_s17, %s40_s17 }
  0x11   :  { %p201_p5 = scmp.ne.s32.totalorder %s40_s17, %s200_s18  ;;  %p206_p7 = scmp.lt.s32.totalorder %s200_s18, %s200_s18 }
  0x13   :  { %p207_p8 = por %p206_p7, %p205_p6 }
  0x15   :  { %p208_p9 = pnand %p207_p8, %p201_p5 }
  0x17   :  { %211 = shalt.err (!%p208_p9)
}
  0x18   :  { %45 = dma.hbm_to_vmem [thread:$0]  %s256_s1, 256, %s40_s17, [#allocation7], %s227_s12, %s227_s12, %s228_s13  }
  0x19   :  { %220 = dma.done.wait [#allocation4], 256  }
  0x1a   :  { %221 = vsyncadd [#allocation4], 4294967040 }
  0x1b   :  { %222 = dma.done.wait [#allocation7], 256  }
  0x1c   :  { %223 = vsyncadd [#allocation7], 4294967040  ;;  %v67_v0 = vld [vmem:[#allocation3] sm:$0xff]  ;;  %v68_v1 = vld [vmem:[#allocation3 + $0x8] sm:$0xff]  ;;  %s230_s22 = smov [#allocation8]  }
  0x1d   :  { %v69_v2 = vld [vmem:[#allocation6] sm:$0xff]  ;;  %v70_v3 = vld [vmem:[#allocation6 + $0x8] sm:$0xff] }
  0x1e   :  { %v71_v4 = vsub.f32 %v67_v0, %v69_v2  ;;  %v73_v5 = vadd.f32 %v69_v2, %v67_v0  ;;  %v77_v6 = vmul.f32 %v69_v2, %v67_v0  ;;  %v72_v7 = vsub.f32 %v68_v1, %v70_v3 }
  0x1f   :  { %v74_v8 = vadd.f32 %v70_v3, %v68_v1  ;;  %v78_v9 = vmul.f32 %v70_v3, %v68_v1 }
  0x20   :  { %v84_v10 = vmul.f32 %v71_v4, %v71_v4  ;;  %v75_v11 = vmul.f32 %v73_v5, %v73_v5  ;;  %v85_v12 = vmul.f32 %v72_v7, %v72_v7  ;;  %v91_v13 = vand.u32 2147483647, %v71_v4 }
  0x21   :  { %v92_v14 = vand.u32 2147483647, %v72_v7  ;;  %v76_v15 = vmul.f32 %v74_v8, %v74_v8 }
  0x22   :  { %v79_v16 = vsub.f32 %v75_v11, %v77_v6  ;;  %v86_v17 = vadd.f32 %v85_v12, %v84_v10 }
  0x23   :  { %v80_v18 = vsub.f32 %v76_v15, %v78_v9  ;;  %v93_v20 = vadd.f32 %v92_v14, %v91_v13 }
  0x24   :  { %v81_v19 = vmul.f32 %v79_v16, %v71_v4  ;;  %107 = vadd.xlane.f32.xlu0 %v86_v17 }
  0x25   :  { %v82_v21 = vmul.f32 %v80_v18, %v72_v7 }
  0x26   :  { %v98_v22 = vmul.f32 %v81_v19, %v81_v19 }
  0x27   :  { %v99_v23 = vmul.f32 %v82_v21, %v82_v21 }
  0x28   :  { %119 = vadd.xlane.f32.xlu0 %v93_v20 }
  0x29   :  { %v100_v24 = vadd.f32 %v99_v23, %v98_v22 }
  0x2b   :  { %131 = vadd.xlane.f32.xlu1 %v100_v24 }
  0xad   :  { %v108_v25 = vpop.xlane.xlu0 %107 }
  0xae   :  { %v109_v26 = vrot.slane %v108_v25, 4 }
  0xb0   :  { %v110_v27 = vadd.f32 %v109_v26, %v108_v25 }
  0xb1   :  { %v120_v28 = vpop.xlane.xlu0 %119 }
  0xb2   :  { %v111_v29 = vrot.slane %v110_v27, 2  ;;  %v121_v30 = vrot.slane %v120_v28, 4 }
  0xb4   :  { %v132_v31 = vpop.xlane.xlu1 %131  ;;  %v122_v32 = vadd.f32 %v121_v30, %v120_v28  ;;  %v112_v34 = vadd.f32 %v111_v29, %v110_v27 }
  0xb5   :  { %v133_v33 = vrot.slane %v132_v31, 4 }
  0xb6   :  { %v123_v35 = vrot.slane %v122_v32, 2  ;;  %v113_v37 = vrot.slane %v112_v34, 1 }
  0xb7   :  { %v134_v36 = vadd.f32 %v133_v33, %v132_v31 }
  0xb8   :  { %v124_v38 = vadd.f32 %v123_v35, %v122_v32  ;;  %v114_v40 = vadd.f32 %v113_v37, %v112_v34 }
  0xb9   :  { %v135_v39 = vrot.slane %v134_v36, 2 }
  0xba   :  { %161 = vpush %v114_v40  ;;  %v125_v42 = vrot.slane %v124_v38, 1 }
  0xbb   :  { %v136_v41 = vadd.f32 %v135_v39, %v134_v36 }
  0xbc   :  { %v126_v43 = vadd.f32 %v125_v42, %v124_v38 }
  0xbd   :  { %v137_v44 = vrot.slane %v136_v41, 1 }
  0xbe   :  { %163 = vpush %v126_v43 }
  0xbf   :  { %v138_v45 = vadd.f32 %v137_v44, %v136_v41 }
  0xc1   :  { %165 = vpush %v138_v45 }
  0xeb   :  { %s162_s0 = spop %161 }
  0xec   :  { %117 = sst [smem:[#allocation8]] %s162_s0 }
  0xef   :  { %s164_s1 = spop %163 }
  0xf0   :  { %129 = sst [smem:[#allocation8 + $0x1]] %s164_s1 }
  0xf2   :  { %s166_s21 = spop %165 }
  0xf3   :  { %141 = sst [smem:[#allocation8 + $0x2]] %s166_s21 }
  0xf4   :  { %149 = dma.smem_to_hbm %s230_s22, 16, %s257_s2, [#allocation5]  }
  0xf5   :  { %224 = dma.done.wait [#allocation5], 16  }
  0xf6   :  { %225 = vsyncadd [#allocation5], 4294967280 }
  0xf7   :  { %153 = sfence }
  0xf8   :  { %154 = vsyncpa [#allocation4], 1 }
  0xf9   :  { %155 = vsyncpa [#allocation7], 1 }
  0xfa   :  { %156 = vsyncpa [#allocation5], 1 }

</bundles_post_ra>
